<compile_context>
chip_gen: v7x
topology: tpu7x:2x2x1
jax: 0.10.0
libtpu: 0.0.40
codegen_flags: <defaults>
</compile_context>

<pallas_src>
import functools

import jax
import jax.numpy as jnp
from jax.experimental import pallas as pl
from jax.experimental.pallas import tpu as pltpu


def _round_up(x, m):
    return (x + m - 1) // m * m


def _conv_bn_relu_kernel(x_ref, xh_ref, w_ref, shift_ref, o_ref, *, ksize):
    """One (batch, L-tile) grid step.

    x_ref:     (1, C_in, TL)    bf16  main input tile (NCL, L on lanes)
    xh_ref:    (1, C_in, HALO)  bf16  right halo (columns [TL, TL+HALO))
    w_ref:     (K, C_out, C_in) bf16  conv weight with BN scale folded in
    shift_ref: (C_out, 1)       f32   folded conv-bias + BN shift
    o_ref:     (1, C_out, TL)   f32
    """
    tl = o_ref.shape[2]
    # Lane-dense concat: (C_in, TL + HALO); HALO >= 2*pad so every tap fits.
    x = jnp.concatenate([x_ref[0], xh_ref[0]], axis=-1)

    acc = jnp.zeros(o_ref.shape[1:], dtype=jnp.float32)        # (C_out, TL)
    for k in range(ksize):                                      # K shifted taps
        acc = acc + jnp.dot(w_ref[k], x[:, k:k + tl],
                            preferred_element_type=jnp.float32)

    y = acc + shift_ref[...]                 # conv bias + BatchNorm (eval) shift
    o_ref[0] = jnp.maximum(y, 0.0).astype(o_ref.dtype)   # ReLU; dropout == id


def conv_bn_relu(x_ncl, weight, bias, gamma, beta, running_mean, running_var,
                 *, eps=1e-5, l_tile=1024, vmem_budget_bytes=12 * 2**20):
    """x_ncl: (N, C_in, L) float32 in the PyTorch Conv1d layout."""
    N, C_in, L = x_ncl.shape
    C_out, C_in_w, K = weight.shape
    assert C_in_w == C_in
    assert K % 2 == 1, "even kernel_size changes PyTorch's output length"
    pad = K // 2

    # Halo block width: lane-aligned, covers all K-1 extra columns.
    halo = max(128, _round_up(2 * pad, 128))

    # --- choose the L tile: multiple of `halo`, double-buffered blocks stay
    #     comfortably inside the default scoped VMEM on v5e/v6e/v7x.
    def _step_bytes(tl):
        return 2 * (C_in * tl * 2 + C_in * halo * 2          # bf16 input blocks
                    + C_out * tl * 4                          # f32 output block
                    + K * C_out * C_in * 2)                   # bf16 weight

    tl = max(halo, min(_round_up(l_tile, halo), _round_up(L, halo)))
    while tl > halo and _step_bytes(tl) > vmem_budget_bytes:
        tl -= halo
    n_lt = pl.cdiv(L, tl)
    l_up = n_lt * tl

    # --- parameter folding (tiny, one-time, outside the kernel) -------------
    scale = gamma / jnp.sqrt(running_var + eps)                   # (C_out,)
    shift = (bias - running_mean) * scale + beta                  # (C_out,)
    # (C_out, C_in, K) -> (K, C_out, C_in), fold BN scale into the weight.
    w_koi = (jnp.transpose(weight, (2, 0, 1))
             * scale[None, :, None]).astype(jnp.bfloat16)
    shift2 = shift.reshape(C_out, 1).astype(jnp.float32)

    # --- input: keep NCL, cast to bf16, zero-pad L once so that every
    #     (tile + halo) window is fully in bounds. ----------------------------
    lp = l_up + halo
    x_pad = jnp.pad(x_ncl.astype(jnp.bfloat16),
                    ((0, 0), (0, 0), (pad, lp - pad - L)))

    kernel = functools.partial(_conv_bn_relu_kernel, ksize=K)
    blocks_per_halo = tl // halo

    out = pl.pallas_call(
        kernel,
        out_shape=jax.ShapeDtypeStruct((N, C_out, l_up), jnp.float32),
        grid_spec=pltpu.PrefetchScalarGridSpec(
            num_scalar_prefetch=0,
            grid=(N, n_lt),
            in_specs=[
                # main tile: columns [t*TL, (t+1)*TL)
                pl.BlockSpec((1, C_in, tl), lambda b, t: (b, 0, t)),
                # halo tile: columns [(t+1)*TL, (t+1)*TL + HALO)
                pl.BlockSpec((1, C_in, halo),
                             lambda b, t: (b, 0, (t + 1) * blocks_per_halo)),
                pl.BlockSpec((K, C_out, C_in), lambda b, t: (0, 0, 0)),
                pl.BlockSpec((C_out, 1), lambda b, t: (0, 0)),
            ],
            out_specs=pl.BlockSpec((1, C_out, tl), lambda b, t: (b, 0, t)),
        ),
        compiler_params=pltpu.CompilerParams(
            dimension_semantics=("parallel", "parallel")),
    )(x_pad, x_pad, w_koi, shift2)

    return out[:, :, :L] if l_up != L else out


def _reference(x_ncl, weight, bias, gamma, beta, mean, var, eps=1e-5):
    """Pure-JAX f32 reference of the eval-mode PyTorch forward."""
    k = weight.shape[-1]
    y = jax.lax.conv_general_dilated(
        x_ncl, weight, window_strides=(1,), padding=[(k // 2, k // 2)],
        dimension_numbers=("NCH", "OIH", "NCH"),
    ) + bias[None, :, None]
    y = (y - mean[None, :, None]) / jnp.sqrt(var[None, :, None] + eps)
    y = y * gamma[None, :, None] + beta[None, :, None]
    return jnp.maximum(y, 0.0)


if __name__ == "__main__":
    # Small shapes consistent with the module: Conv1d over a short sequence.
    N, d_in, d_out, L, ksize = 2, 4, 8, 16, 3

    key = jax.random.PRNGKey(0)
    k_x, k_w, k_b, k_g, k_bt, k_m, k_v = jax.random.split(key, 7)

    x = jax.random.normal(k_x, (N, d_in, L), dtype=jnp.float32)
    weight = 0.1 * jax.random.normal(k_w, (d_out, d_in, ksize), dtype=jnp.float32)
    bias = 0.1 * jax.random.normal(k_b, (d_out,), dtype=jnp.float32)
    gamma = 1.0 + 0.1 * jax.random.normal(k_g, (d_out,), dtype=jnp.float32)
    beta = 0.1 * jax.random.normal(k_bt, (d_out,), dtype=jnp.float32)
    running_mean = 0.1 * jax.random.normal(k_m, (d_out,), dtype=jnp.float32)
    running_var = jnp.abs(1.0 + 0.1 * jax.random.normal(k_v, (d_out,),
                                                        dtype=jnp.float32))

    out = conv_bn_relu(x, weight, bias, gamma, beta, running_mean, running_var)
    out = jax.block_until_ready(out)

    ref = _reference(x, weight, bias, gamma, beta, running_mean, running_var)
    assert out.shape == (N, d_out, L)
    # bf16 matmul operands in the kernel -> loose tolerance vs the f32 reference.
    assert jnp.allclose(out, ref, atol=2e-2, rtol=2e-2), "mismatch vs reference"

    print("KERNEL_OK")
</pallas_src>

<mosaic_0001>
module attributes {stable_mosaic.version = 11 : i64} {
  func.func @_conv_bn_relu_kernel(%arg0: i32, %arg1: i32, %arg2: memref<1x4x128xbf16, #tpu.memory_space<vmem>>, %arg3: memref<1x4x128xbf16, #tpu.memory_space<vmem>>, %arg4: memref<3x8x4xbf16, #tpu.memory_space<vmem>>, %arg5: memref<8x1xf32, #tpu.memory_space<vmem>>, %arg6: memref<1x8x128xf32, #tpu.memory_space<vmem>>) attributes {dimension_semantics = [#tpu.dimension_semantics<parallel>, #tpu.dimension_semantics<parallel>], iteration_bounds = array<i64: 2, 1>, scalar_prefetch = 0 : i64, scratch_operands = 0 : i64, tpu.core_type = #tpu.core_type<tc>, window_params = [{transform_indices = @transform_0, window_bounds = array<i64: 1, 4, 128>}, {transform_indices = @transform_1, window_bounds = array<i64: 1, 4, 128>}, {pipeline_mode = #tpu.pipeline_mode<synchronous>, transform_indices = @transform_2, window_bounds = array<i64: 3, 8, 4>}, {pipeline_mode = #tpu.pipeline_mode<synchronous>, transform_indices = @transform_3, window_bounds = array<i64: 8, 1>}, {transform_indices = @transform_4, window_bounds = array<i64: 1, 8, 128>}]} {
    %c0 = arith.constant 0 : index
    %c0_0 = arith.constant 0 : index
    %c0_1 = arith.constant 0 : index
    %0 = vector.load %arg2[%c0, %c0_0, %c0_1] : memref<1x4x128xbf16, #tpu.memory_space<vmem>>, vector<1x4x128xbf16>
    %1 = vector.shape_cast %0 : vector<1x4x128xbf16> to vector<4x128xbf16>
    %c0_2 = arith.constant 0 : index
    %c0_3 = arith.constant 0 : index
    %c0_4 = arith.constant 0 : index
    %2 = vector.load %arg3[%c0_2, %c0_3, %c0_4] : memref<1x4x128xbf16, #tpu.memory_space<vmem>>, vector<1x4x128xbf16>
    %3 = vector.shape_cast %2 : vector<1x4x128xbf16> to vector<4x128xbf16>
    %4 = tpu.concatenate %1, %3 in 1 : vector<4x128xbf16>, vector<4x128xbf16> -> vector<4x256xbf16>
    %cst = arith.constant 0.000000e+00 : f32
    %5 = vector.broadcast %cst : f32 to vector<8x128xf32>
    %c0_5 = arith.constant 0 : index
    %c0_6 = arith.constant 0 : index
    %c0_7 = arith.constant 0 : index
    %6 = vector.load %arg4[%c0_5, %c0_6, %c0_7] : memref<3x8x4xbf16, #tpu.memory_space<vmem>>, vector<1x8x4xbf16>
    %7 = vector.shape_cast %6 : vector<1x8x4xbf16> to vector<8x4xbf16>
    %8 = vector.extract_strided_slice %4 {offsets = [0, 0], sizes = [4, 128], strides = [1, 1]} : vector<4x256xbf16> to vector<4x128xbf16>
    %cst_8 = arith.constant dense<0.000000e+00> : vector<8x128xf32>
    %9 = tpu.matmul %7, %8, %cst_8 {dimension_numbers = #tpu.dot_dimension_numbers<[1], [0], [0], [1], [0, 0, 1, 1], [], []>} : vector<8x4xbf16>, vector<4x128xbf16>, vector<8x128xf32> -> vector<8x128xf32>
    %10 = arith.addf %5, %9 : vector<8x128xf32>
    %c1 = arith.constant 1 : index
    %c0_9 = arith.constant 0 : index
    %c0_10 = arith.constant 0 : index
    %11 = vector.load %arg4[%c1, %c0_9, %c0_10] : memref<3x8x4xbf16, #tpu.memory_space<vmem>>, vector<1x8x4xbf16>
    %12 = vector.shape_cast %11 : vector<1x8x4xbf16> to vector<8x4xbf16>
    %13 = vector.extract_strided_slice %4 {offsets = [0, 1], sizes = [4, 128], strides = [1, 1]} : vector<4x256xbf16> to vector<4x128xbf16>
    %cst_11 = arith.constant dense<0.000000e+00> : vector<8x128xf32>
    %14 = tpu.matmul %12, %13, %cst_11 {dimension_numbers = #tpu.dot_dimension_numbers<[1], [0], [0], [1], [0, 0, 1, 1], [], []>} : vector<8x4xbf16>, vector<4x128xbf16>, vector<8x128xf32> -> vector<8x128xf32>
    %15 = arith.addf %10, %14 : vector<8x128xf32>
    %c2 = arith.constant 2 : index
    %c0_12 = arith.constant 0 : index
    %c0_13 = arith.constant 0 : index
    %16 = vector.load %arg4[%c2, %c0_12, %c0_13] : memref<3x8x4xbf16, #tpu.memory_space<vmem>>, vector<1x8x4xbf16>
    %17 = vector.shape_cast %16 : vector<1x8x4xbf16> to vector<8x4xbf16>
    %18 = vector.extract_strided_slice %4 {offsets = [0, 2], sizes = [4, 128], strides = [1, 1]} : vector<4x256xbf16> to vector<4x128xbf16>
    %cst_14 = arith.constant dense<0.000000e+00> : vector<8x128xf32>
    %19 = tpu.matmul %17, %18, %cst_14 {dimension_numbers = #tpu.dot_dimension_numbers<[1], [0], [0], [1], [0, 0, 1, 1], [], []>} : vector<8x4xbf16>, vector<4x128xbf16>, vector<8x128xf32> -> vector<8x128xf32>
    %20 = arith.addf %15, %19 : vector<8x128xf32>
    %c0_15 = arith.constant 0 : index
    %c0_16 = arith.constant 0 : index
    %21 = vector.load %arg5[%c0_15, %c0_16] : memref<8x1xf32, #tpu.memory_space<vmem>>, vector<8x1xf32>
    %22 = vector.broadcast %21 : vector<8x1xf32> to vector<8x128xf32>
    %23 = arith.addf %20, %22 : vector<8x128xf32>
    %cst_17 = arith.constant 0.000000e+00 : f32
    %24 = vector.broadcast %cst_17 : f32 to vector<8x128xf32>
    %25 = arith.maximumf %23, %24 : vector<8x128xf32>
    %c0_18 = arith.constant 0 : index
    %c0_19 = arith.constant 0 : index
    %c0_20 = arith.constant 0 : index
    %26 = vector.load %arg6[%c0_18, %c0_19, %c0_20] : memref<1x8x128xf32, #tpu.memory_space<vmem>>, vector<1x8x128xf32>
    %27 = vector.shape_cast %26 : vector<1x8x128xf32> to vector<8x128xf32>
    %28 = vector.shape_cast %25 : vector<8x128xf32> to vector<1x8x128xf32>
    tpu.vector_store %arg6[%c0_18, %c0_19, %c0_20], %28 {strides = array<i32>} : memref<1x8x128xf32, #tpu.memory_space<vmem>>, vector<1x8x128xf32>,
    return
  }
  func.func @transform_0(%arg0: i32, %arg1: i32) -> (i32, i32, i32) {
    %c0_i32 = arith.constant 0 : i32
    %c0_i32_0 = arith.constant 0 : i32
    return %arg0, %c0_i32, %arg1 : i32, i32, i32
  }
  func.func @transform_1(%arg0: i32, %arg1: i32) -> (i32, i32, i32) {
    %c1_i32 = arith.constant 1 : i32
    %0 = arith.addi %arg1, %c1_i32 : i32
    %c1_i32_0 = arith.constant 1 : i32
    %1 = arith.muli %0, %c1_i32_0 : i32
    %c0_i32 = arith.constant 0 : i32
    %c0_i32_1 = arith.constant 0 : i32
    return %arg0, %c0_i32, %1 : i32, i32, i32
  }
  func.func @transform_2(%arg0: i32, %arg1: i32) -> (i32, i32, i32) {
    %c0_i32 = arith.constant 0 : i32
    %c0_i32_0 = arith.constant 0 : i32
    %c0_i32_1 = arith.constant 0 : i32
    %c0_i32_2 = arith.constant 0 : i32
    return %c0_i32, %c0_i32_0, %c0_i32_1 : i32, i32, i32
  }
  func.func @transform_3(%arg0: i32, %arg1: i32) -> (i32, i32) {
    %c0_i32 = arith.constant 0 : i32
    %c0_i32_0 = arith.constant 0 : i32
    %c0_i32_1 = arith.constant 0 : i32
    return %c0_i32, %c0_i32_0 : i32, i32
  }
  func.func @transform_4(%arg0: i32, %arg1: i32) -> (i32, i32, i32) {
    %c0_i32 = arith.constant 0 : i32
    %c0_i32_0 = arith.constant 0 : i32
    return %arg0, %c0_i32, %arg1 : i32, i32, i32
  }
}

</mosaic_0001>

<bundles_post_ra>
// kernel: tpu_custom_call.1
= control target key start
LH: loop header
LB: loop body
LE: loop exit
PB: predicated region body
PF: predicated region fallthrough
CT: control target
= control target key end

     0   :  { %9 = vsyncpa [#allocation3], 0  ;;  %s893_s0 = inlined_call_operand.vmem [shape: bf16[2,4,256], index: 0, kind: input, shape index: {}]   ;;  %s894_s1 = inlined_call_operand.vmem [shape: bf16[2,4,256], index: 1, kind: input, shape index: {}]   ;;  %s895_s2 = inlined_call_operand.vmem [shape: bf16[3,8,4], index: 2, kind: input, shape index: {}]   ;;  %s896_s3 = inlined_call_operand.vmem [shape: f32[8,1], index: 3, kind: input, shape index: {}]   ;;  %s897_s4 = inlined_call_operand.hbm [shape: f32[2,8,128], index: 4, kind: output, shape index: {}]  }
   0x1   :  { %11 = vsyncpa [#allocation3 + $0x1], 0  ;;  %s757_s15 = smov 0   ;;  %s759_s16 = smov 0  }
   0x2   :  { %s761_s17 = smov 0   ;;  %s763_s18 = smov 0  }
   0x3   :  { %s765_s19 = smov 0   ;;  %s767_s20 = smov 0  }
   0x4 LB: > { %s538_s21 = sadd.s32 4294967295, %s724_s20   ;;  %s539_s22 = sadd.s32 4294967294, %s724_s20   ;;  %s724_s20 = sphi %s767_s20, %s17_s20   ;;  %s720_s19 = sphi %s765_s19, %s904_s19   ;;  %s716_s18 = sphi %s763_s18, %s903_s18   ;;  %s712_s17 = sphi %s761_s17, %s902_s17   ;;  %s708_s16 = sphi %s759_s16, %s901_s16   ;;  %s704_s15 = sphi %s757_s15, %s900_s15  }
   0x5   : > { %s29_s23 = sadd.s32 1, %s720_s19  ;;  %s138_s24 = sadd.s32 1, %s712_s17 }
   0x6   : > { %p31_p0 = scmp.ge.s32.totalorder %s29_s23, 2  ;;  %p148_p1 = scmp.ne.s32.totalorder %s712_s17, %s708_s16 }
   0x7   : > { %p149_p2 = scmp.eq.s32.totalorder %s538_s21, 1  ;;  %p154_p3 = scmp.ne.s32.totalorder %s708_s16, %s704_s15 }
   0x8   : > { %s906_s23 = smov (%p31_p0, %s29_s23), 0  ;;  %p155_p5 = scmp.eq.s32.totalorder %s539_s22, 1 }
   0x9   : > { %p797_p4 = por %p149_p2, %p148_p1  ;;  %s133_s26 = ssub.s32 %s720_s19, %s906_s23 }
   0xa   : > { %p542_p6 = scmp.ge.s32.totalorder %s724_s20, 1  ;;  %p136_p7 = scmp.eq.s32.totalorder %s133_s26, 0 }
   0xb   : > { %p804_p8 = por %p155_p5, %p154_p3  ;;  %p203_p9 = scmp.lt.s32.totalorder %s724_s20, 3 }
   0xc   : > { %s810_s28 = scalar_select %p136_p7, %s712_s17, %s138_s24  }
   0xd   : > { %p204_p10 = pnand %p542_p6, %p203_p9 }
   0xe   : > { %p241_p11 = scmp.lt.s32.totalorder (!%p204_p10), %s716_s18, 1  ;;  %v726_v0 = vmov (!%p204_p10), 0.0   ;;  %vm727_vm0 = vmmov (!%p204_p10), 0   ;;  %vm277_vm1 = vcmask (!%p204_p10), 1041408   ;;  %s728_s12 = smov (!%p204_p10), 126   ;;  %vm273_vm2 = vcmask (!%p204_p10), 31744  }
   0xf   : > { %207 = sbr.rel (%p204_p10) target bundleno = 391 (0x187), region = 36  ;;  %567 = vmatprep.subr.bf16.mxu0 (!%p204_p10), %v726_v0  ;;  %573 = vmatprep.subr.bf16.mxu1 (!%p204_p10), %v726_v0  ;;  %s729_s13 = smov (!%p204_p10), 127   ;;  %v262_v4 = vld [vmem:[%s895_s2] sm:$0xf] (!%p204_p10)  ;;  %v730_v5 = vmov (!%p204_p10), 0   ;;  %vm373_vm3 = vcmask (!%p204_p10), 1031168  }
  0x10   : > { %569 = vmatprep.mubr.msk.bf16.mxu0 (!%p204_p10), %vm727_vm0, %v726_v0  ;;  %575 = vmatprep.mubr.msk.bf16.mxu1 (!%p204_p10), %vm727_vm0, %v726_v0  ;;  %v422_v6 = vld [vmem:[%s896_s3] sm:$0xff] (!%p204_p10)  ;;  %vm271_vm4 = vcmask (!%p204_p10), 1039360   ;;  %v551_v16 = vld [vmem:[%s895_s2 + $0x8] sm:$0xf] (!%p204_p10)  ;;  %s238_s6 = sand.u32 (!%p204_p10), 1, %s708_s16  }
  0x11   : > { %645 = vset.pattern.permute.xlu0 (!%p204_p10), %v730_v5  ;;  %v548_v14 = vld [vmem:[%s895_s2 + $0x4] sm:$0xf] (!%p204_p10)  ;;  %s432_s14 = scalar_lea.sflag (!%p204_p10), [#allocation3], %s238_s6 }
  0x16   : > { %s242_s29 = scalar_select %p241_p11, %s716_s18, 1 }
  0x18   : > { %s557_s30 = sshll.u32 %s242_s29, 2 }
  0x19   : > { %s248_s7 = scalar_lea.vmem %s893_s0, %s557_s30  ;;  %s559_s8 = sadd.s32 2, %s557_s30 }
  0x1a   : > { %v260_v1 = vld [vmem:[%s248_s7] sm:$0x3]  ;;  %s257_s11 = scalar_lea.vmem %s894_s1, %s559_s8  ;;  %s543_s7 = sshll.u32 %s238_s6, 3 }
  0x1b   : > { %369 = vrot.lane.b32.xlu1 %v260_v1, %s728_s12  ;;  %267 = vrot.lane.b32.xlu0 %v260_v1, %s729_s13  ;;  %v325_v2 = vsel %vm277_vm1, %v260_v1, 0  ;;  %v261_v3 = vld [vmem:[%s257_s11] sm:$0x3]  ;;  %s554_s8 = sshll.u32 %s716_s18, 7  ;;  %s240_s9 = scalar_lea.vmem [#allocation2], %s543_s7 }
  0x1c   : > { %574 = vmatpush3.bf16.msra.mxu1 %v325_v2  ;;  %s446_s10 = sshll.u32 %s240_s9, 4  ;;  %s731_s18 = smov [#allocation2]   ;;  %s848_s10 = int_to_ptr.vmem [resolvable:$true] %s446_s10 }
  0x1d   : > { %s646_s21 = scalar_lea.vmem %s848_s10, 128  ;;  %s650_s22 = sshll.u32 %s731_s18, 4  ;;  %s651_s22 = int_to_ptr.vmem [resolvable:$false] %s650_s22 }
  0x1e   : > { %p647_p12 = scmp.ne.s32.totalorder %s848_s10, %s646_s21  ;;  %s652_s24 = scalar_lea.vmem %s651_s22, 256 }
  0x1f   : > { %371 = vrot.lane.b32.xlu1 %v261_v3, %s728_s12  ;;  %269 = vrot.lane.b32.xlu0 %v261_v3, %s729_s13  ;;  %s846_s13 = scalar_lea.hbm %s897_s4, %s554_s8  ;;  %p653_p1 = scmp.lt.s32.totalorder %s848_s10, %s651_s22 }
  0x20   : > { %576 = vmatmul.mubr.msk.bf16.vlgmr.msra.gmra.mrb[0].mxu1 %vm273_vm2, %v262_v4  ;;  %p648_p13 = pnand %p647_p12, %p797_p4  ;;  %p654_p2 = scmp.lt.s32.totalorder %s652_s24, %s646_s21 }
  0x22   : > { %p649_p0 = pneg %p648_p13  ;;  %p655_p3 = por %p654_p2, %p653_p1 }
  0x23   : > { %425 = vperm.xlu0 %645, %v422_v6  }
  0x24   : > { %p656_p5 = pnand %p655_p3, %p649_p0 }
  0x8d   : > { %v370_v7 = vpop.permute.xlu1 %369  ;;  %v268_v8 = vpop.permute.xlu0 %267 }
  0x91   : > { %v372_v9 = vpop.permute.xlu1 %371  ;;  %v270_v10 = vpop.permute.xlu0 %269 }
  0x92   : > { %v374_v11 = vsel %vm373_vm3, %v370_v7, %v372_v9  ;;  %v272_v12 = vsel %vm271_vm4, %v268_v8, %v270_v10 }
  0x93   : > { %v279_v13 = vsel %vm277_vm1, %v272_v12, 0  ;;  %v379_v15 = vsel %vm277_vm1, %v374_v11, 0 }
  0x94   : > { %568 = vmatpush3.bf16.msra.mxu0 %v279_v13 }
  0x95   : > { %579 = vmatprep.subr.bf16.mxu0 %v726_v0 }
  0x97   : > { %570 = vmatmul.mubr.msk.bf16.vlgmr.msra.gmra.mrb[0].mxu0 %vm273_vm2, %v548_v14 }
  0x98   : > { %580 = vmatpush3.bf16.msra.mxu0 %v379_v15  ;;  %581 = vmatprep.mubr.msk.bf16.mxu0 %vm727_vm0, %v726_v0 }
  0x9f   : > { %582 = vmatmul.mubr.msk.bf16.vlgmr.msra.gmra.mrb[4].mxu0 %vm273_vm2, %v551_v16 }
  0xa2   : > { %v426_v27 = vpop.permute.xlu0 %425 }
  0xf3   : > { %v361_v17 = vpop.f32.mrb[0].mxu1 }
  0xf4   : > { %v577_v18 = vpop.f32.mrb[1].mxu1 }
  0xf5   : > { %v364_v19 = vpop.f32.mrb[2].mxu1 }
  0xf6   : > { %v578_v20 = vpop.f32.mrb[3].mxu1 }
 0x16a   : > { %v315_v21 = vpop.f32.mrb[0].mxu0 }
 0x16b   : > { %v571_v22 = vpop.f32.mrb[1].mxu0  ;;  %v362_v23 = vadd.f32 %v361_v17, %v315_v21 }
 0x16c   : > { %v318_v24 = vpop.f32.mrb[2].mxu0 }
 0x16d   : > { %v572_v25 = vpop.f32.mrb[3].mxu0 }
 0x172   : > { %v415_v26 = vpop.f32.mrb[4].mxu0 }
 0x173   : > { %v421_v28 = vadd.f32 %v415_v26, %v362_v23  ;;  %v583_v29 = vpop.f32.mrb[5].mxu0 }
 0x174   : > { %v418_v30 = vpop.f32.mrb[6].mxu0 }
 0x175   : > { %v428_v31 = vadd.f32 %v426_v27, %v421_v28  ;;  %v584_v32 = vpop.f32.mrb[7].mxu0 }
 0x177   : > { %v429_v33 = vmax.f32 %v428_v31, 0.0 }
 0x179   : > { %430 = vst [vmem:[%s240_s9] sm:$0xff] %v429_v33 }
 0x17a   : > { %659 = shalt.err (!%p656_p5)
}
 0x17b   : > { %s660_s26 = scalar_lea.hbm %s846_s13, 128  ;;  %s664_s5 = scalar_lea.hbm %s897_s4, 256 }
 0x17c   : > { %p661_p6 = scmp.ne.s32.totalorder %s846_s13, %s660_s26  ;;  %p665_p10 = scmp.lt.u32.totalorder %s846_s13, %s897_s4 }
 0x17d   : > { %p666_p11 = scmp.lt.u32.totalorder %s664_s5, %s660_s26  ;;  %p668_p13 = scmp.lt.u32.totalorder %s660_s26, %s846_s13 }
 0x17e   : > { %p662_p7 = pnand %p661_p6, %p797_p4 }
 0x17f   : > { %p667_p12 = por %p666_p11, %p665_p10 }
 0x180   : > { %p663_p9 = pneg %p662_p7 }
 0x181   : > { %p669_p0 = por %p668_p13, %p667_p12 }
 0x183   : > { %p670_p1 = pnand %p669_p0, %p663_p9 }
 0x185   : > { %673 = shalt.err (!%p670_p1)
}
 0x186   : > { %585 = dma.vmem_to_hbm [thread:$0]  (%p797_p4), %s848_s10, 128, %s846_s13, %s432_s14  }
 0x187 PF: > { %p591_p2 = scmp.ge.s32.totalorder %s724_s20, 2  ;;  %s458_s8 = sand.u32 1, %s704_s15  }
 0x188   : > { %s459_s9 = scalar_lea.sflag [#allocation3], %s458_s8 }
 0x189   : > { %p588_p3 = pnand %p591_p2, %p804_p8 }
 0x18b   : > { %699 = dma.done.wait (!%p588_p3), %s459_s9, 128  }
 0x18c   : > { %701 = vsyncadd (!%p588_p3), %s459_s9, 4294967168  ;;  %s17_s20 = sadd.s32 1, %s724_s20   ;;  %s900_s15 = smov %s708_s16 }
 0x18d   : > { %p14_p5 = scmp.ge.s32.totalorder %s17_s20, 4   ;;  %s901_s16 = smov %s712_s17 }
 0x18e   : > { %s902_s17 = smov %s810_s28  ;;  %s903_s18 = smov %s720_s19 }
 0x18f   : > { %s904_s19 = smov %s906_s23  ;;  %16 = sbr.rel (!%p14_p5) target bundleno = 4 (0x4), region = 76 }
 0x196   :  { %464 = vsyncpa [#allocation3], 1 }
 0x197   :  { %466 = vsyncpa [#allocation3 + $0x1], 1 }

</bundles_post_ra>
